<compile_context>
chip_gen: v5e
topology: v5e:2x2
jax: 0.10.0
libtpu: 0.0.40
codegen_flags: <defaults>
</compile_context>

<pallas_src>
import functools

import jax
import jax.numpy as jnp
from jax.experimental import pallas as pl
from jax.experimental.pallas import tpu as pltpu

_LANE = 128
_SUBLANE = 8


def _round_up(x, m):
    return ((x + m - 1) // m) * m


def _cdiv(a, b):
    return (a + b - 1) // b


# ---------------------------------------------------------------------------
# Kernel: refs = (x, w_0, b_0, w_1, b_1, ..., w_{L-1}, b_{L-1}, o)
# h = act(h @ W_l + b_l) for l < num_act, linear afterwards.
# ---------------------------------------------------------------------------
def _fnn_kernel(*refs, num_layers, num_act, activation):
    x_ref, o_ref = refs[0], refs[-1]
    h = x_ref[...]                                    # (TM, P0) f32, lane-dense
    for l in range(num_layers):                       # static unroll over layers
        w_ref = refs[1 + 2 * l]
        b_ref = refs[2 + 2 * l]
        # bf16 operands -> native MXU rate; accumulate in f32.
        y = jnp.dot(h.astype(w_ref.dtype), w_ref[...],
                    preferred_element_type=jnp.float32)
        y = y + b_ref[...]                            # (1, P_l) broadcast
        if l < num_act:
            y = jnp.tanh(y) if activation == "tanh" else jnp.sin(y)
        h = y
    o_ref[...] = h.astype(o_ref.dtype)


# ---------------------------------------------------------------------------
# Parameter construction (matches the PyTorch __init__: xavier_normal_ weights,
# zero biases). Weights stored pre-transposed as (in_features, out_features).
# ---------------------------------------------------------------------------
def init_fnn_params(key, layer_sizes):
    params = []
    for i in range(1, len(layer_sizes)):
        fan_in, fan_out = layer_sizes[i - 1], layer_sizes[i]
        key, sub = jax.random.split(key)
        std = (2.0 / (fan_in + fan_out)) ** 0.5
        w_t = std * jax.random.normal(sub, (fan_in, fan_out), dtype=jnp.float32)
        b = jnp.zeros((fan_out,), dtype=jnp.float32)
        params.append((w_t, b))
    return params


def _pack_layer(w_t, b, p_in, p_out, weight_dtype):
    """Zero-pad one layer's weight to (p_in, p_out) and bias to (1, p_out)."""
    fi, fo = w_t.shape
    wp = jnp.zeros((p_in, p_out), weight_dtype).at[:fi, :fo].set(
        w_t.astype(weight_dtype))
    bp = jnp.zeros((1, p_out), jnp.float32).at[0, :fo].set(b)
    return wp, bp


def _vmem_capacity_bytes():
    """Per-TensorCore VMEM capacity (v5e/v6e: 128 MiB, v7x: 64 MiB)."""
    try:
        cap = getattr(pltpu.get_tpu_info(), "vmem_capacity_bytes", None)
        if cap:
            return int(cap)
    except Exception:
        pass
    try:
        kind = jax.devices()[0].device_kind.lower()
    except Exception:
        kind = ""
    if "v7" in kind:
        return 64 * 1024 * 1024
    return 128 * 1024 * 1024


# ---------------------------------------------------------------------------
# One fused pallas_call over a stack of layers (weights resident in VMEM,
# batch tiled along a 1-D "parallel" grid, activations never touch HBM).
# ---------------------------------------------------------------------------
def _fused_call(x_p, packed, pads, tm, num_act, activation, vmem_limit):
    num_layers = len(packed)
    n_pad = x_p.shape[0]
    grid = n_pad // tm

    flat_inputs = [x_p]
    for wp, bp in packed:
        flat_inputs += [wp, bp]

    def build(single_buffer_resident):
        resident_kw = (
            {"pipeline_mode": pl.Buffered(1)} if single_buffer_resident else {}
        )
        in_specs = [pl.BlockSpec((tm, pads[0]), lambda i: (i, 0))]
        for l in range(num_layers):
            # Constant index_maps -> weights/biases stay resident across steps.
            in_specs.append(pl.BlockSpec((pads[l], pads[l + 1]),
                                         lambda i: (0, 0), **resident_kw))
            in_specs.append(pl.BlockSpec((1, pads[l + 1]),
                                         lambda i: (0, 0), **resident_kw))
        kernel = functools.partial(_fnn_kernel, num_layers=num_layers,
                                   num_act=num_act, activation=activation)
        return pl.pallas_call(
            kernel,
            out_shape=jax.ShapeDtypeStruct((n_pad, pads[-1]), jnp.float32),
            grid_spec=pltpu.PrefetchScalarGridSpec(
                num_scalar_prefetch=0,
                grid=(grid,),
                in_specs=in_specs,
                out_specs=pl.BlockSpec((tm, pads[-1]), lambda i: (i, 0)),
            ),
            compiler_params=pltpu.CompilerParams(
                # Batch tiles are independent; shards across the 2 TCs on v7x.
                dimension_semantics=("parallel",),
                vmem_limit_bytes=vmem_limit,
            ),
        )

    try:
        return build(True)(*flat_inputs)
    except Exception:
        # Fallback if this JAX build rejects pipeline_mode=pl.Buffered(1):
        # default (double-buffered) resident specs.
        return build(False)(*flat_inputs)


def fnn_forward(params, x, activation="tanh"):
    """Forward pass of FNN: hidden layers get activation, last layer linear."""
    if activation not in ("tanh", "sin"):
        raise NotImplementedError(activation)
    n, d_in = x.shape
    d_out = params[-1][0].shape[1]
    num_layers = len(params)

    # Per-layer lane-dense padded feature widths.
    dims = [d_in] + [w.shape[1] for w, _ in params]
    pads = [_round_up(d, _LANE) for d in dims]

    # --- generation-aware VMEM budget --------------------------------------
    capacity = _vmem_capacity_bytes()
    vmem_limit = min(capacity - 12 * 1024 * 1024, int(capacity * 0.82))
    budget = int(vmem_limit * 0.85)  # planning headroom

    # Resident footprint: bf16 weights + f32 bias tiles (sublane-padded to 8).
    layer_bytes = [pads[l] * pads[l + 1] * 2 + _SUBLANE * pads[l + 1] * 4
                   for l in range(num_layers)]
    resident_bytes = sum(layer_bytes)

    # Per-batch-row activation VMEM (x/out pipeline buffers + intermediates).
    per_row = 4 * (3 * pads[0] + 3 * pads[-1] + 4 * max(pads))

    fused_fits = resident_bytes + _SUBLANE * per_row <= budget
    resident_plan = resident_bytes if fused_fits else max(layer_bytes)

    # --- batch tile ---------------------------------------------------------
    tm_cap = 1024 if capacity >= 96 * 1024 * 1024 else 512   # 128 MiB vs 64 MiB
    tm = min(tm_cap, _round_up(max(n, 1), _SUBLANE))
    while tm > _SUBLANE and resident_plan + tm * per_row > budget:
        tm //= 2
    tm = max(_round_up(tm, _SUBLANE), _SUBLANE)
    # Avoid padding overshoot (e.g. n=600 previously padded to 1024).
    num_tiles = _cdiv(max(n, 1), tm)
    tm = min(tm, _round_up(_cdiv(max(n, 1), num_tiles), _SUBLANE))
    n_pad = _round_up(max(n, 1), tm)

    x_p = jnp.zeros((n_pad, pads[0]), jnp.float32).at[:n, :d_in].set(x)
    packed = [_pack_layer(w, b, pads[l], pads[l + 1], jnp.bfloat16)
              for l, (w, b) in enumerate(params)]

    if fused_fits:
        try:
            out_p = _fused_call(x_p, packed, pads, tm,
                                num_act=num_layers - 1, activation=activation,
                                vmem_limit=vmem_limit)
            return out_p[:n, :d_out]
        except Exception:
            pass  # fall through to layer-wise streaming

    # VMEM fallback: one pallas_call per layer (weight resident per layer,
    # activations streamed through HBM between layers).
    # TODO(synk): stream a single over-sized layer's weight from HBM with
    # pltpu.emit_pipeline over the reduction axis instead of requiring it to fit.
    h = x_p
    for l in range(num_layers):
        h = _fused_call(h, [packed[l]], pads[l:l + 2], tm,
                        num_act=(1 if l < num_layers - 1 else 0),
                        activation=activation, vmem_limit=vmem_limit)
    return h[:n, :d_out]


def fnn_reference(params, x, activation="tanh"):
    """Pure-JAX f32 reference for correctness check."""
    act = jnp.tanh if activation == "tanh" else jnp.sin
    for (w_t, b) in params[:-1]:
        x = act(x @ w_t + b)
    w_t, b = params[-1]
    return x @ w_t + b


if __name__ == "__main__":
    layer_sizes = [4, 32, 32, 2]
    batch = 8

    key = jax.random.PRNGKey(0)
    key_p, key_x = jax.random.split(key)
    params = init_fnn_params(key_p, layer_sizes)
    x = jax.random.normal(key_x, (batch, layer_sizes[0]), dtype=jnp.float32)

    out = fnn_forward(params, x, activation="tanh")
    out = jax.block_until_ready(out)

    ref = fnn_reference(params, x, activation="tanh")
    assert out.shape == (batch, layer_sizes[-1])
    # bf16 MXU operands (f32 accumulation) -> loosened tolerance vs f32 ref.
    assert jnp.allclose(out, ref, atol=3e-2, rtol=3e-2), "mismatch vs reference"

    print("KERNEL_OK")
</pallas_src>

<mosaic_0001>
module attributes {stable_mosaic.version = 11 : i64} {
  func.func @_fnn_kernel(%arg0: i32, %arg1: memref<8x128xf32, #tpu.memory_space<vmem>>, %arg2: memref<128x128xbf16, #tpu.memory_space<vmem>>, %arg3: memref<1x128xf32, #tpu.memory_space<vmem>>, %arg4: memref<128x128xbf16, #tpu.memory_space<vmem>>, %arg5: memref<1x128xf32, #tpu.memory_space<vmem>>, %arg6: memref<128x128xbf16, #tpu.memory_space<vmem>>, %arg7: memref<1x128xf32, #tpu.memory_space<vmem>>, %arg8: memref<8x128xf32, #tpu.memory_space<vmem>>) attributes {dimension_semantics = [#tpu.dimension_semantics<parallel>], iteration_bounds = array<i64: 1>, scalar_prefetch = 0 : i64, scratch_operands = 0 : i64, tpu.core_type = #tpu.core_type<tc>, window_params = [{transform_indices = @transform_0, window_bounds = array<i64: 8, 128>}, {pipeline_mode = #tpu.pipeline_mode<synchronous>, transform_indices = @transform_1, window_bounds = array<i64: 128, 128>}, {pipeline_mode = #tpu.pipeline_mode<synchronous>, transform_indices = @transform_2, window_bounds = array<i64: 1, 128>}, {pipeline_mode = #tpu.pipeline_mode<synchronous>, transform_indices = @transform_3, window_bounds = array<i64: 128, 128>}, {pipeline_mode = #tpu.pipeline_mode<synchronous>, transform_indices = @transform_4, window_bounds = array<i64: 1, 128>}, {pipeline_mode = #tpu.pipeline_mode<synchronous>, transform_indices = @transform_5, window_bounds = array<i64: 128, 128>}, {pipeline_mode = #tpu.pipeline_mode<synchronous>, transform_indices = @transform_6, window_bounds = array<i64: 1, 128>}, {transform_indices = @transform_7, window_bounds = array<i64: 8, 128>}]} {
    %c0 = arith.constant 0 : index
    %c0_0 = arith.constant 0 : index
    %0 = vector.load %arg1[%c0, %c0_0] : memref<8x128xf32, #tpu.memory_space<vmem>>, vector<8x128xf32>
    %1 = arith.truncf %0 : vector<8x128xf32> to vector<8x128xbf16>
    %c0_1 = arith.constant 0 : index
    %c0_2 = arith.constant 0 : index
    %2 = vector.load %arg2[%c0_1, %c0_2] : memref<128x128xbf16, #tpu.memory_space<vmem>>, vector<128x128xbf16>
    %cst = arith.constant dense<0.000000e+00> : vector<8x128xf32>
    %3 = tpu.matmul %1, %2, %cst {dimension_numbers = #tpu.dot_dimension_numbers<[1], [0], [0], [1], [0, 0, 1, 1], [], []>} : vector<8x128xbf16>, vector<128x128xbf16>, vector<8x128xf32> -> vector<8x128xf32>
    %c0_3 = arith.constant 0 : index
    %c0_4 = arith.constant 0 : index
    %4 = vector.load %arg3[%c0_3, %c0_4] : memref<1x128xf32, #tpu.memory_space<vmem>>, vector<1x128xf32>
    %5 = vector.broadcast %4 : vector<1x128xf32> to vector<8x128xf32>
    %6 = arith.addf %3, %5 : vector<8x128xf32>
    %7 = math.tanh %6 : vector<8x128xf32>
    %8 = arith.truncf %7 : vector<8x128xf32> to vector<8x128xbf16>
    %c0_5 = arith.constant 0 : index
    %c0_6 = arith.constant 0 : index
    %9 = vector.load %arg4[%c0_5, %c0_6] : memref<128x128xbf16, #tpu.memory_space<vmem>>, vector<128x128xbf16>
    %cst_7 = arith.constant dense<0.000000e+00> : vector<8x128xf32>
    %10 = tpu.matmul %8, %9, %cst_7 {dimension_numbers = #tpu.dot_dimension_numbers<[1], [0], [0], [1], [0, 0, 1, 1], [], []>} : vector<8x128xbf16>, vector<128x128xbf16>, vector<8x128xf32> -> vector<8x128xf32>
    %c0_8 = arith.constant 0 : index
    %c0_9 = arith.constant 0 : index
    %11 = vector.load %arg5[%c0_8, %c0_9] : memref<1x128xf32, #tpu.memory_space<vmem>>, vector<1x128xf32>
    %12 = vector.broadcast %11 : vector<1x128xf32> to vector<8x128xf32>
    %13 = arith.addf %10, %12 : vector<8x128xf32>
    %14 = math.tanh %13 : vector<8x128xf32>
    %15 = arith.truncf %14 : vector<8x128xf32> to vector<8x128xbf16>
    %c0_10 = arith.constant 0 : index
    %c0_11 = arith.constant 0 : index
    %16 = vector.load %arg6[%c0_10, %c0_11] : memref<128x128xbf16, #tpu.memory_space<vmem>>, vector<128x128xbf16>
    %cst_12 = arith.constant dense<0.000000e+00> : vector<8x128xf32>
    %17 = tpu.matmul %15, %16, %cst_12 {dimension_numbers = #tpu.dot_dimension_numbers<[1], [0], [0], [1], [0, 0, 1, 1], [], []>} : vector<8x128xbf16>, vector<128x128xbf16>, vector<8x128xf32> -> vector<8x128xf32>
    %c0_13 = arith.constant 0 : index
    %c0_14 = arith.constant 0 : index
    %18 = vector.load %arg7[%c0_13, %c0_14] : memref<1x128xf32, #tpu.memory_space<vmem>>, vector<1x128xf32>
    %19 = vector.broadcast %18 : vector<1x128xf32> to vector<8x128xf32>
    %20 = arith.addf %17, %19 : vector<8x128xf32>
    %c0_15 = arith.constant 0 : index
    %c0_16 = arith.constant 0 : index
    %21 = vector.load %arg8[%c0_15, %c0_16] : memref<8x128xf32, #tpu.memory_space<vmem>>, vector<8x128xf32>
    tpu.vector_store %arg8[%c0_15, %c0_16], %20 {strides = array<i32>} : memref<8x128xf32, #tpu.memory_space<vmem>>, vector<8x128xf32>,
    return
  }
  func.func @transform_0(%arg0: i32) -> (i32, i32) {
    %c0_i32 = arith.constant 0 : i32
    %c0_i32_0 = arith.constant 0 : i32
    return %arg0, %c0_i32 : i32, i32
  }
  func.func @transform_1(%arg0: i32) -> (i32, i32) {
    %c0_i32 = arith.constant 0 : i32
    %c0_i32_0 = arith.constant 0 : i32
    %c0_i32_1 = arith.constant 0 : i32
    return %c0_i32, %c0_i32_0 : i32, i32
  }
  func.func @transform_2(%arg0: i32) -> (i32, i32) {
    %c0_i32 = arith.constant 0 : i32
    %c0_i32_0 = arith.constant 0 : i32
    %c0_i32_1 = arith.constant 0 : i32
    return %c0_i32, %c0_i32_0 : i32, i32
  }
  func.func @transform_3(%arg0: i32) -> (i32, i32) {
    %c0_i32 = arith.constant 0 : i32
    %c0_i32_0 = arith.constant 0 : i32
    %c0_i32_1 = arith.constant 0 : i32
    return %c0_i32, %c0_i32_0 : i32, i32
  }
  func.func @transform_4(%arg0: i32) -> (i32, i32) {
    %c0_i32 = arith.constant 0 : i32
    %c0_i32_0 = arith.constant 0 : i32
    %c0_i32_1 = arith.constant 0 : i32
    return %c0_i32, %c0_i32_0 : i32, i32
  }
  func.func @transform_5(%arg0: i32) -> (i32, i32) {
    %c0_i32 = arith.constant 0 : i32
    %c0_i32_0 = arith.constant 0 : i32
    %c0_i32_1 = arith.constant 0 : i32
    return %c0_i32, %c0_i32_0 : i32, i32
  }
  func.func @transform_6(%arg0: i32) -> (i32, i32) {
    %c0_i32 = arith.constant 0 : i32
    %c0_i32_0 = arith.constant 0 : i32
    %c0_i32_1 = arith.constant 0 : i32
    return %c0_i32, %c0_i32_0 : i32, i32
  }
  func.func @transform_7(%arg0: i32) -> (i32, i32) {
    %c0_i32 = arith.constant 0 : i32
    %c0_i32_0 = arith.constant 0 : i32
    return %arg0, %c0_i32 : i32, i32
  }
}

module attributes {stable_mosaic.version = 11 : i64} {
  func.func @_fnn_kernel(%arg0: i32, %arg1: memref<8x128xf32, #tpu.memory_space<vmem>>, %arg2: memref<128x128xbf16, #tpu.memory_space<vmem>>, %arg3: memref<1x128xf32, #tpu.memory_space<vmem>>, %arg4: memref<128x128xbf16, #tpu.memory_space<vmem>>, %arg5: memref<1x128xf32, #tpu.memory_space<vmem>>, %arg6: memref<128x128xbf16, #tpu.memory_space<vmem>>, %arg7: memref<1x128xf32, #tpu.memory_space<vmem>>, %arg8: memref<8x128xf32, #tpu.memory_space<vmem>>) attributes {dimension_semantics = [#tpu.dimension_semantics<parallel>], iteration_bounds = array<i64: 1>, scalar_prefetch = 0 : i64, scratch_operands = 0 : i64, tpu.core_type = #tpu.core_type<tc>, window_params = [{transform_indices = @transform_0, window_bounds = array<i64: 8, 128>}, {pipeline_mode = #tpu.pipeline_mode<synchronous>, transform_indices = @transform_1, window_bounds = array<i64: 128, 128>}, {pipeline_mode = #tpu.pipeline_mode<synchronous>, transform_indices = @transform_2, window_bounds = array<i64: 1, 128>}, {pipeline_mode = #tpu.pipeline_mode<synchronous>, transform_indices = @transform_3, window_bounds = array<i64: 128, 128>}, {pipeline_mode = #tpu.pipeline_mode<synchronous>, transform_indices = @transform_4, window_bounds = array<i64: 1, 128>}, {pipeline_mode = #tpu.pipeline_mode<synchronous>, transform_indices = @transform_5, window_bounds = array<i64: 128, 128>}, {pipeline_mode = #tpu.pipeline_mode<synchronous>, transform_indices = @transform_6, window_bounds = array<i64: 1, 128>}, {transform_indices = @transform_7, window_bounds = array<i64: 8, 128>}]} {
    %c0 = arith.constant 0 : index
    %c0_0 = arith.constant 0 : index
    %0 = vector.load %arg1[%c0, %c0_0] : memref<8x128xf32, #tpu.memory_space<vmem>>, vector<8x128xf32>
    %1 = arith.truncf %0 : vector<8x128xf32> to vector<8x128xbf16>
    %c0_1 = arith.constant 0 : index
    %c0_2 = arith.constant 0 : index
    %2 = vector.load %arg2[%c0_1, %c0_2] : memref<128x128xbf16, #tpu.memory_space<vmem>>, vector<128x128xbf16>
    %cst = arith.constant dense<0.000000e+00> : vector<8x128xf32>
    %3 = tpu.matmul %1, %2, %cst {dimension_numbers = #tpu.dot_dimension_numbers<[1], [0], [0], [1], [0, 0, 1, 1], [], []>} : vector<8x128xbf16>, vector<128x128xbf16>, vector<8x128xf32> -> vector<8x128xf32>
    %c0_3 = arith.constant 0 : index
    %c0_4 = arith.constant 0 : index
    %4 = vector.load %arg3[%c0_3, %c0_4] : memref<1x128xf32, #tpu.memory_space<vmem>>, vector<1x128xf32>
    %5 = vector.broadcast %4 : vector<1x128xf32> to vector<8x128xf32>
    %6 = arith.addf %3, %5 : vector<8x128xf32>
    %7 = math.tanh %6 : vector<8x128xf32>
    %8 = arith.truncf %7 : vector<8x128xf32> to vector<8x128xbf16>
    %c0_5 = arith.constant 0 : index
    %c0_6 = arith.constant 0 : index
    %9 = vector.load %arg4[%c0_5, %c0_6] : memref<128x128xbf16, #tpu.memory_space<vmem>>, vector<128x128xbf16>
    %cst_7 = arith.constant dense<0.000000e+00> : vector<8x128xf32>
    %10 = tpu.matmul %8, %9, %cst_7 {dimension_numbers = #tpu.dot_dimension_numbers<[1], [0], [0], [1], [0, 0, 1, 1], [], []>} : vector<8x128xbf16>, vector<128x128xbf16>, vector<8x128xf32> -> vector<8x128xf32>
    %c0_8 = arith.constant 0 : index
    %c0_9 = arith.constant 0 : index
    %11 = vector.load %arg5[%c0_8, %c0_9] : memref<1x128xf32, #tpu.memory_space<vmem>>, vector<1x128xf32>
    %12 = vector.broadcast %11 : vector<1x128xf32> to vector<8x128xf32>
    %13 = arith.addf %10, %12 : vector<8x128xf32>
    %14 = math.tanh %13 : vector<8x128xf32>
    %15 = arith.truncf %14 : vector<8x128xf32> to vector<8x128xbf16>
    %c0_10 = arith.constant 0 : index
    %c0_11 = arith.constant 0 : index
    %16 = vector.load %arg6[%c0_10, %c0_11] : memref<128x128xbf16, #tpu.memory_space<vmem>>, vector<128x128xbf16>
    %cst_12 = arith.constant dense<0.000000e+00> : vector<8x128xf32>
    %17 = tpu.matmul %15, %16, %cst_12 {dimension_numbers = #tpu.dot_dimension_numbers<[1], [0], [0], [1], [0, 0, 1, 1], [], []>} : vector<8x128xbf16>, vector<128x128xbf16>, vector<8x128xf32> -> vector<8x128xf32>
    %c0_13 = arith.constant 0 : index
    %c0_14 = arith.constant 0 : index
    %18 = vector.load %arg7[%c0_13, %c0_14] : memref<1x128xf32, #tpu.memory_space<vmem>>, vector<1x128xf32>
    %19 = vector.broadcast %18 : vector<1x128xf32> to vector<8x128xf32>
    %20 = arith.addf %17, %19 : vector<8x128xf32>
    %c0_15 = arith.constant 0 : index
    %c0_16 = arith.constant 0 : index
    %21 = vector.load %arg8[%c0_15, %c0_16] : memref<8x128xf32, #tpu.memory_space<vmem>>, vector<8x128xf32>
    tpu.vector_store %arg8[%c0_15, %c0_16], %20 {strides = array<i32>} : memref<8x128xf32, #tpu.memory_space<vmem>>, vector<8x128xf32>,
    return
  }
  func.func @transform_0(%arg0: i32) -> (i32, i32) {
    %c0_i32 = arith.constant 0 : i32
    %c0_i32_0 = arith.constant 0 : i32
    return %arg0, %c0_i32 : i32, i32
  }
  func.func @transform_1(%arg0: i32) -> (i32, i32) {
    %c0_i32 = arith.constant 0 : i32
    %c0_i32_0 = arith.constant 0 : i32
    %c0_i32_1 = arith.constant 0 : i32
    return %c0_i32, %c0_i32_0 : i32, i32
  }
  func.func @transform_2(%arg0: i32) -> (i32, i32) {
    %c0_i32 = arith.constant 0 : i32
    %c0_i32_0 = arith.constant 0 : i32
    %c0_i32_1 = arith.constant 0 : i32
    return %c0_i32, %c0_i32_0 : i32, i32
  }
  func.func @transform_3(%arg0: i32) -> (i32, i32) {
    %c0_i32 = arith.constant 0 : i32
    %c0_i32_0 = arith.constant 0 : i32
    %c0_i32_1 = arith.constant 0 : i32
    return %c0_i32, %c0_i32_0 : i32, i32
  }
  func.func @transform_4(%arg0: i32) -> (i32, i32) {
    %c0_i32 = arith.constant 0 : i32
    %c0_i32_0 = arith.constant 0 : i32
    %c0_i32_1 = arith.constant 0 : i32
    return %c0_i32, %c0_i32_0 : i32, i32
  }
  func.func @transform_5(%arg0: i32) -> (i32, i32) {
    %c0_i32 = arith.constant 0 : i32
    %c0_i32_0 = arith.constant 0 : i32
    %c0_i32_1 = arith.constant 0 : i32
    return %c0_i32, %c0_i32_0 : i32, i32
  }
  func.func @transform_6(%arg0: i32) -> (i32, i32) {
    %c0_i32 = arith.constant 0 : i32
    %c0_i32_0 = arith.constant 0 : i32
    %c0_i32_1 = arith.constant 0 : i32
    return %c0_i32, %c0_i32_0 : i32, i32
  }
  func.func @transform_7(%arg0: i32) -> (i32, i32) {
    %c0_i32 = arith.constant 0 : i32
    %c0_i32_0 = arith.constant 0 : i32
    return %arg0, %c0_i32 : i32, i32
  }
}

module attributes {stable_mosaic.version = 11 : i64} {
  func.func @_fnn_kernel(%arg0: i32, %arg1: memref<8x128xf32, #tpu.memory_space<vmem>>, %arg2: memref<128x128xbf16, #tpu.memory_space<vmem>>, %arg3: memref<1x128xf32, #tpu.memory_space<vmem>>, %arg4: memref<8x128xf32, #tpu.memory_space<vmem>>) attributes {dimension_semantics = [#tpu.dimension_semantics<parallel>], iteration_bounds = array<i64: 1>, scalar_prefetch = 0 : i64, scratch_operands = 0 : i64, tpu.core_type = #tpu.core_type<tc>, window_params = [{transform_indices = @transform_0, window_bounds = array<i64: 8, 128>}, {pipeline_mode = #tpu.pipeline_mode<synchronous>, transform_indices = @transform_1, window_bounds = array<i64: 128, 128>}, {pipeline_mode = #tpu.pipeline_mode<synchronous>, transform_indices = @transform_2, window_bounds = array<i64: 1, 128>}, {transform_indices = @transform_3, window_bounds = array<i64: 8, 128>}]} {
    %c0 = arith.constant 0 : index
    %c0_0 = arith.constant 0 : index
    %0 = vector.load %arg1[%c0, %c0_0] : memref<8x128xf32, #tpu.memory_space<vmem>>, vector<8x128xf32>
    %1 = arith.truncf %0 : vector<8x128xf32> to vector<8x128xbf16>
    %c0_1 = arith.constant 0 : index
    %c0_2 = arith.constant 0 : index
    %2 = vector.load %arg2[%c0_1, %c0_2] : memref<128x128xbf16, #tpu.memory_space<vmem>>, vector<128x128xbf16>
    %cst = arith.constant dense<0.000000e+00> : vector<8x128xf32>
    %3 = tpu.matmul %1, %2, %cst {dimension_numbers = #tpu.dot_dimension_numbers<[1], [0], [0], [1], [0, 0, 1, 1], [], []>} : vector<8x128xbf16>, vector<128x128xbf16>, vector<8x128xf32> -> vector<8x128xf32>
    %c0_3 = arith.constant 0 : index
    %c0_4 = arith.constant 0 : index
    %4 = vector.load %arg3[%c0_3, %c0_4] : memref<1x128xf32, #tpu.memory_space<vmem>>, vector<1x128xf32>
    %5 = vector.broadcast %4 : vector<1x128xf32> to vector<8x128xf32>
    %6 = arith.addf %3, %5 : vector<8x128xf32>
    %7 = math.tanh %6 : vector<8x128xf32>
    %c0_5 = arith.constant 0 : index
    %c0_6 = arith.constant 0 : index
    %8 = vector.load %arg4[%c0_5, %c0_6] : memref<8x128xf32, #tpu.memory_space<vmem>>, vector<8x128xf32>
    tpu.vector_store %arg4[%c0_5, %c0_6], %7 {strides = array<i32>} : memref<8x128xf32, #tpu.memory_space<vmem>>, vector<8x128xf32>,
    return
  }
  func.func @transform_0(%arg0: i32) -> (i32, i32) {
    %c0_i32 = arith.constant 0 : i32
    %c0_i32_0 = arith.constant 0 : i32
    return %arg0, %c0_i32 : i32, i32
  }
  func.func @transform_1(%arg0: i32) -> (i32, i32) {
    %c0_i32 = arith.constant 0 : i32
    %c0_i32_0 = arith.constant 0 : i32
    %c0_i32_1 = arith.constant 0 : i32
    return %c0_i32, %c0_i32_0 : i32, i32
  }
  func.func @transform_2(%arg0: i32) -> (i32, i32) {
    %c0_i32 = arith.constant 0 : i32
    %c0_i32_0 = arith.constant 0 : i32
    %c0_i32_1 = arith.constant 0 : i32
    return %c0_i32, %c0_i32_0 : i32, i32
  }
  func.func @transform_3(%arg0: i32) -> (i32, i32) {
    %c0_i32 = arith.constant 0 : i32
    %c0_i32_0 = arith.constant 0 : i32
    return %arg0, %c0_i32 : i32, i32
  }
}

module attributes {stable_mosaic.version = 11 : i64} {
  func.func @_fnn_kernel(%arg0: i32, %arg1: memref<8x128xf32, #tpu.memory_space<vmem>>, %arg2: memref<128x128xbf16, #tpu.memory_space<vmem>>, %arg3: memref<1x128xf32, #tpu.memory_space<vmem>>, %arg4: memref<8x128xf32, #tpu.memory_space<vmem>>) attributes {dimension_semantics = [#tpu.dimension_semantics<parallel>], iteration_bounds = array<i64: 1>, scalar_prefetch = 0 : i64, scratch_operands = 0 : i64, tpu.core_type = #tpu.core_type<tc>, window_params = [{transform_indices = @transform_0, window_bounds = array<i64: 8, 128>}, {pipeline_mode = #tpu.pipeline_mode<synchronous>, transform_indices = @transform_1, window_bounds = array<i64: 128, 128>}, {pipeline_mode = #tpu.pipeline_mode<synchronous>, transform_indices = @transform_2, window_bounds = array<i64: 1, 128>}, {transform_indices = @transform_3, window_bounds = array<i64: 8, 128>}]} {
    %c0 = arith.constant 0 : index
    %c0_0 = arith.constant 0 : index
    %0 = vector.load %arg1[%c0, %c0_0] : memref<8x128xf32, #tpu.memory_space<vmem>>, vector<8x128xf32>
    %1 = arith.truncf %0 : vector<8x128xf32> to vector<8x128xbf16>
    %c0_1 = arith.constant 0 : index
    %c0_2 = arith.constant 0 : index
    %2 = vector.load %arg2[%c0_1, %c0_2] : memref<128x128xbf16, #tpu.memory_space<vmem>>, vector<128x128xbf16>
    %cst = arith.constant dense<0.000000e+00> : vector<8x128xf32>
    %3 = tpu.matmul %1, %2, %cst {dimension_numbers = #tpu.dot_dimension_numbers<[1], [0], [0], [1], [0, 0, 1, 1], [], []>} : vector<8x128xbf16>, vector<128x128xbf16>, vector<8x128xf32> -> vector<8x128xf32>
    %c0_3 = arith.constant 0 : index
    %c0_4 = arith.constant 0 : index
    %4 = vector.load %arg3[%c0_3, %c0_4] : memref<1x128xf32, #tpu.memory_space<vmem>>, vector<1x128xf32>
    %5 = vector.broadcast %4 : vector<1x128xf32> to vector<8x128xf32>
    %6 = arith.addf %3, %5 : vector<8x128xf32>
    %7 = math.tanh %6 : vector<8x128xf32>
    %c0_5 = arith.constant 0 : index
    %c0_6 = arith.constant 0 : index
    %8 = vector.load %arg4[%c0_5, %c0_6] : memref<8x128xf32, #tpu.memory_space<vmem>>, vector<8x128xf32>
    tpu.vector_store %arg4[%c0_5, %c0_6], %7 {strides = array<i32>} : memref<8x128xf32, #tpu.memory_space<vmem>>, vector<8x128xf32>,
    return
  }
  func.func @transform_0(%arg0: i32) -> (i32, i32) {
    %c0_i32 = arith.constant 0 : i32
    %c0_i32_0 = arith.constant 0 : i32
    return %arg0, %c0_i32 : i32, i32
  }
  func.func @transform_1(%arg0: i32) -> (i32, i32) {
    %c0_i32 = arith.constant 0 : i32
    %c0_i32_0 = arith.constant 0 : i32
    %c0_i32_1 = arith.constant 0 : i32
    return %c0_i32, %c0_i32_0 : i32, i32
  }
  func.func @transform_2(%arg0: i32) -> (i32, i32) {
    %c0_i32 = arith.constant 0 : i32
    %c0_i32_0 = arith.constant 0 : i32
    %c0_i32_1 = arith.constant 0 : i32
    return %c0_i32, %c0_i32_0 : i32, i32
  }
  func.func @transform_3(%arg0: i32) -> (i32, i32) {
    %c0_i32 = arith.constant 0 : i32
    %c0_i32_0 = arith.constant 0 : i32
    return %arg0, %c0_i32 : i32, i32
  }
}

</mosaic_0001>

<bundles_post_ra>
// kernel: tpu_custom_call.1
= control target key start
LH: loop header
LB: loop body
LE: loop exit
PB: predicated region body
PF: predicated region fallthrough
CT: control target
= control target key end

     0   :  { %12 = vsyncpa [#allocation3], 0  ;;  %s690_s0 = inlined_call_operand.hbm [shape: f32[8,128], index: 0, kind: input, shape index: {}]   ;;  %s691_s1 = inlined_call_operand.hbm [shape: bf16[128,128], index: 1, kind: input, shape index: {}]   ;;  %s692_s2 = inlined_call_operand.vmem [shape: f32[1,128], index: 2, kind: input, shape index: {}]   ;;  %s693_s3 = inlined_call_operand.hbm [shape: bf16[128,128], index: 3, kind: input, shape index: {}]   ;;  %s694_s4 = inlined_call_operand.vmem [shape: f32[1,128], index: 4, kind: input, shape index: {}]   ;;  %s695_s5 = inlined_call_operand.hbm [shape: bf16[128,128], index: 5, kind: input, shape index: {}]   ;;  %s696_s6 = inlined_call_operand.vmem [shape: f32[1,128], index: 6, kind: input, shape index: {}]   ;;  %s697_s7 = inlined_call_operand.hbm [shape: f32[8,128], index: 7, kind: output, shape index: {}]  }
   0x1   :  { %13 = vsyncpa [#allocation6], 0 }
   0x2   :  { %14 = vsyncpa [#allocation9], 0  ;;  %s31_s26 = sshll.u32 %s691_s1, 4  ;;  %s32_s26 = int_to_ptr.hbm [resolvable:$true] %s31_s26 }
   0x3   :  { %15 = vsyncpa [#allocation4], 0  ;;  %s619_s27 = smov [#allocation5]   ;;  %s21_s8 = sshll.u32 %s690_s0, 4  ;;  %s22_s8 = int_to_ptr.hbm [resolvable:$true] %s21_s8 }
   0x4   :  { %s33_s28 = sshll.u32 %s619_s27, 4  ;;  %s620_s9 = smov 64   ;;  %s34_s28 = int_to_ptr.vmem [resolvable:$true] %s33_s28 }
   0x5   :  { %s621_s10 = smov 4   ;;  %s622_s11 = smov [#allocation2]  }
   0x6   :  { %39 = dma.hbm_to_vmem [thread:$0]  %s32_s26, 1024, %s34_s28, [#allocation6], %s620_s9, %s620_s9, %s621_s10  }
   0x7   :  { %s23_s12 = sshll.u32 %s622_s11, 4  ;;  %s46_s15 = sshll.u32 %s693_s3, 4  ;;  %s24_s12 = int_to_ptr.vmem [resolvable:$true] %s23_s12  ;;  %s47_s15 = int_to_ptr.hbm [resolvable:$true] %s46_s15 }
   0x8   :  { %26 = dma.hbm_to_vmem [thread:$0]  %s22_s8, 128, %s24_s12, [#allocation3]  }
   0x9   :  { %s61_s17 = sshll.u32 %s695_s5, 4  ;;  %s623_s18 = smov [#allocation7]   ;;  %s62_s17 = int_to_ptr.hbm [resolvable:$true] %s61_s17 }
   0xa   :  { %s48_s19 = sshll.u32 %s623_s18, 4  ;;  %s624_s0 = smov [#allocation8]   ;;  %s49_s19 = int_to_ptr.vmem [resolvable:$true] %s48_s19 }
   0xb   :  { %54 = dma.hbm_to_vmem [thread:$0]  %s47_s15, 1024, %s49_s19, [#allocation6], %s620_s9, %s620_s9, %s621_s10  }
   0xc   :  { %s63_s20 = sshll.u32 %s624_s0, 4  ;;  %s64_s20 = int_to_ptr.vmem [resolvable:$true] %s63_s20 }
   0xd   :  { %69 = dma.hbm_to_vmem [thread:$0]  %s62_s17, 1024, %s64_s20, [#allocation9], %s620_s9, %s620_s9, %s621_s10  }
   0xe   :  { %611 = dma.done.wait [#allocation3], 128  }
   0xf   :  { %612 = vsyncadd [#allocation3], 4294967168 }
  0x10   :  { %613 = dma.done.wait [#allocation6], 2048  }
  0x11   :  { %614 = vsyncadd [#allocation6], 4294965248 }
  0x12   :  { %615 = dma.done.wait [#allocation9], 1024  }
  0x13   :  { %616 = vsyncadd [#allocation9], 4294966272  ;;  %v460_v0 = vld [vmem:[#allocation5 + $0x38] sm:$0xff]  ;;  %v459_v1 = vld [vmem:[#allocation5 + $0x30] sm:$0xff]  ;;  %s625_s24 = smov [#allocation10]   ;;  %s345_s28 = sshll.u32 %s697_s7, 4  ;;  %s346_s28 = int_to_ptr.hbm [resolvable:$true] %s345_s28 }
  0x14   :  { %158 = vmatpush.bf16.msra.mxu0 %v460_v0  ;;  %v468_v2 = vld [vmem:[#allocation7 + $0x38] sm:$0xff]  ;;  %v467_v3 = vld [vmem:[#allocation7 + $0x30] sm:$0xff]  ;;  %v458_v4 = vld [vmem:[#allocation5 + $0x28] sm:$0xff]  ;;  %s343_s25 = sshll.u32 %s625_s24, 4  ;;  %s344_s25 = int_to_ptr.vmem [resolvable:$true] %s343_s25 }
  0x15   :  { %241 = vmatpush.bf16.msra.mxu1 %v468_v2  ;;  %v466_v5 = vld [vmem:[#allocation7 + $0x28] sm:$0xff]  ;;  %v457_v6 = vld [vmem:[#allocation5 + $0x20] sm:$0xff]  ;;  %v456_v8 = vld [vmem:[#allocation5 + $0x18] sm:$0xff] }
  0x16   :  { %v465_v7 = vld [vmem:[#allocation7 + $0x20] sm:$0xff]  ;;  %v464_v9 = vld [vmem:[#allocation7 + $0x18] sm:$0xff]  ;;  %v455_v10 = vld [vmem:[#allocation5 + $0x10] sm:$0xff] }
  0x17   :  { %v454_v11 = vld [vmem:[#allocation5 + $0x8] sm:$0xff]  ;;  %v453_v12 = vld [vmem:[#allocation5] sm:$0xff]  ;;  %v88_v13 = vld [vmem:[#allocation2] sm:$0xff] }
  0x18   :  { %159 = vmatpush.bf16.msra.mxu0 %v459_v1  ;;  %v89_v14 = vpack.c.bf16 %v88_v13, %v88_v13  ;;  %v463_v15 = vld [vmem:[#allocation7 + $0x10] sm:$0xff]  ;;  %v462_v16 = vld [vmem:[#allocation7 + $0x8] sm:$0xff]  ;;  %v461_v17 = vld [vmem:[#allocation7] sm:$0xff] }
  0x19   :  { %242 = vmatpush.bf16.msra.mxu1 %v467_v3  ;;  %v476_v18 = vld [vmem:[#allocation8 + $0x38] sm:$0xff]  ;;  %v475_v19 = vld [vmem:[#allocation8 + $0x30] sm:$0xff]  ;;  %v474_v20 = vld [vmem:[#allocation8 + $0x28] sm:$0xff] }
  0x1a   :  { %324 = vmatpush.bf16.msra.mxu2 %v476_v18  ;;  %v473_v21 = vld [vmem:[#allocation8 + $0x20] sm:$0xff]  ;;  %v472_v22 = vld [vmem:[#allocation8 + $0x18] sm:$0xff]  ;;  %v471_v29 = vld [vmem:[#allocation8 + $0x10] sm:$0xff] }
  0x1b   :  { %v484_v23 = vld [vmem:[%s692_s2] ss:$0 sm:$0xff]  ;;  %v470_v30 = vld [vmem:[#allocation8 + $0x8] sm:$0xff]  ;;  %v469_v31 = vld [vmem:[#allocation8] sm:$0xff] }
  0x1c   :  { %160 = vmatpush.bf16.msra.mxu0 %v458_v4  ;;  %v485_v32 = vld [vmem:[%s694_s4] ss:$0 sm:$0xff] }
  0x1d   :  { %243 = vmatpush.bf16.msra.mxu1 %v466_v5  ;;  %v486_v38 = vld [vmem:[%s696_s6] ss:$0 sm:$0xff] }
  0x1e   :  { %325 = vmatpush.bf16.msra.mxu2 %v475_v19 }
  0x20   :  { %161 = vmatpush.bf16.msra.mxu0 %v457_v6 }
  0x21   :  { %244 = vmatpush.bf16.msra.mxu1 %v465_v7 }
  0x22   :  { %326 = vmatpush.bf16.msra.mxu2 %v474_v20 }
  0x24   :  { %162 = vmatpush.bf16.msra.mxu0 %v456_v8 }
  0x25   :  { %245 = vmatpush.bf16.msra.mxu1 %v464_v9 }
  0x26   :  { %327 = vmatpush.bf16.msra.mxu2 %v473_v21 }
  0x28   :  { %163 = vmatpush.bf16.msra.mxu0 %v455_v10 }
  0x29   :  { %246 = vmatpush.bf16.msra.mxu1 %v463_v15 }
  0x2a   :  { %328 = vmatpush.bf16.msra.mxu2 %v472_v22 }
  0x2c   :  { %164 = vmatpush.bf16.msra.mxu0 %v454_v11 }
  0x2d   :  { %247 = vmatpush.bf16.msra.mxu1 %v462_v16 }
  0x2e   :  { %329 = vmatpush.bf16.msra.mxu2 %v471_v29 }
  0x30   :  { %165 = vmatpush.bf16.msra.mxu0 %v453_v12 }
  0x31   :  { %248 = vmatpush.bf16.msra.mxu1 %v461_v17 }
  0x32   :  { %330 = vmatpush.bf16.msra.mxu2 %v470_v30 }
  0x33   :  { %166 = vmatmul.bf16.vlgmr.msra.gmra.mxu0 %v89_v14 }
  0x36   :  { %331 = vmatpush.bf16.msra.mxu2 %v469_v31 }
  0xb0   :  { %v167_v24 = vpop.f32.mrf.mxu0 }
  0xb1   :  { %v168_v25 = vadd.f32 %v484_v23, %v167_v24 }
  0xb3   :  { %487 = vtanh.f32 %v168_v25 }
  0xb8   :  { %v169_v26 = vpop.f32.mrf.mxu0 }
  0xb9   :  { %v488_v27 = vpop.eup %487 }
  0xba   :  { %v172_v28 = vpack.c.bf16 %v488_v27, %v488_v27 }
  0xbc   :  { %249 = vmatmul.bf16.vlgmr.msra.gmra.mxu1 %v172_v28 }
 0x139   :  { %v250_v33 = vpop.f32.mrf.mxu1 }
 0x13a   :  { %v251_v34 = vadd.f32 %v485_v32, %v250_v33 }
 0x13c   :  { %489 = vtanh.f32 %v251_v34 }
 0x141   :  { %v252_v35 = vpop.f32.mrf.mxu1 }
 0x142   :  { %v490_v36 = vpop.eup %489 }
 0x143   :  { %v255_v37 = vpack.c.bf16 %v490_v36, %v490_v36 }
 0x145   :  { %332 = vmatmul.bf16.vlgmr.msra.gmra.mxu2 %v255_v37 }
 0x1c8   :  { %v333_v39 = vpop.f32.mrf.mxu2 }
 0x1c9   :  { %v334_v40 = vadd.f32 %v486_v38, %v333_v39 }
 0x1cb   :  { %337 = vst [vmem:[#allocation10] sm:$0xff] %v334_v40 }
 0x1cc   :  { %348 = dma.vmem_to_hbm [thread:$0]  %s344_s25, 128, %s346_s28, [#allocation4]  }
 0x1d0   :  { %v335_v41 = vpop.f32.mrf.mxu2 }
 0x1d1   :  { %617 = dma.done.wait [#allocation4], 128  }
 0x1d2   :  { %618 = vsyncadd [#allocation4], 4294967168 }
 0x1d3   :  { %353 = vsyncpa [#allocation3], 1 }
 0x1d4   :  { %354 = vsyncpa [#allocation6], 1 }
 0x1d5   :  { %355 = vsyncpa [#allocation9], 1 }
 0x1d6   :  { %356 = vsyncpa [#allocation4], 1 }

// kernel: tpu_custom_call.1
= control target key start
LH: loop header
LB: loop body
LE: loop exit
PB: predicated region body
PF: predicated region fallthrough
CT: control target
= control target key end

     0   :  { %12 = vsyncpa [#allocation3], 0  ;;  %s690_s0 = inlined_call_operand.hbm [shape: f32[8,128], index: 0, kind: input, shape index: {}]   ;;  %s691_s1 = inlined_call_operand.hbm [shape: bf16[128,128], index: 1, kind: input, shape index: {}]   ;;  %s692_s2 = inlined_call_operand.vmem [shape: f32[1,128], index: 2, kind: input, shape index: {}]   ;;  %s693_s3 = inlined_call_operand.hbm [shape: bf16[128,128], index: 3, kind: input, shape index: {}]   ;;  %s694_s4 = inlined_call_operand.vmem [shape: f32[1,128], index: 4, kind: input, shape index: {}]   ;;  %s695_s5 = inlined_call_operand.hbm [shape: bf16[128,128], index: 5, kind: input, shape index: {}]   ;;  %s696_s6 = inlined_call_operand.vmem [shape: f32[1,128], index: 6, kind: input, shape index: {}]   ;;  %s697_s7 = inlined_call_operand.hbm [shape: f32[8,128], index: 7, kind: output, shape index: {}]  }
   0x1   :  { %13 = vsyncpa [#allocation6], 0 }
   0x2   :  { %14 = vsyncpa [#allocation9], 0  ;;  %s31_s26 = sshll.u32 %s691_s1, 4  ;;  %s32_s26 = int_to_ptr.hbm [resolvable:$true] %s31_s26 }
   0x3   :  { %15 = vsyncpa [#allocation4], 0  ;;  %s619_s27 = smov [#allocation5]   ;;  %s21_s8 = sshll.u32 %s690_s0, 4  ;;  %s22_s8 = int_to_ptr.hbm [resolvable:$true] %s21_s8 }
   0x4   :  { %s33_s28 = sshll.u32 %s619_s27, 4  ;;  %s620_s9 = smov 64   ;;  %s34_s28 = int_to_ptr.vmem [resolvable:$true] %s33_s28 }
   0x5   :  { %s621_s10 = smov 4   ;;  %s622_s11 = smov [#allocation2]  }
   0x6   :  { %39 = dma.hbm_to_vmem [thread:$0]  %s32_s26, 1024, %s34_s28, [#allocation6], %s620_s9, %s620_s9, %s621_s10  }
   0x7   :  { %s23_s12 = sshll.u32 %s622_s11, 4  ;;  %s46_s15 = sshll.u32 %s693_s3, 4  ;;  %s24_s12 = int_to_ptr.vmem [resolvable:$true] %s23_s12  ;;  %s47_s15 = int_to_ptr.hbm [resolvable:$true] %s46_s15 }
   0x8   :  { %26 = dma.hbm_to_vmem [thread:$0]  %s22_s8, 128, %s24_s12, [#allocation3]  }
   0x9   :  { %s61_s17 = sshll.u32 %s695_s5, 4  ;;  %s623_s18 = smov [#allocation7]   ;;  %s62_s17 = int_to_ptr.hbm [resolvable:$true] %s61_s17 }
   0xa   :  { %s48_s19 = sshll.u32 %s623_s18, 4  ;;  %s624_s0 = smov [#allocation8]   ;;  %s49_s19 = int_to_ptr.vmem [resolvable:$true] %s48_s19 }
   0xb   :  { %54 = dma.hbm_to_vmem [thread:$0]  %s47_s15, 1024, %s49_s19, [#allocation6], %s620_s9, %s620_s9, %s621_s10  }
   0xc   :  { %s63_s20 = sshll.u32 %s624_s0, 4  ;;  %s64_s20 = int_to_ptr.vmem [resolvable:$true] %s63_s20 }
   0xd   :  { %69 = dma.hbm_to_vmem [thread:$0]  %s62_s17, 1024, %s64_s20, [#allocation9], %s620_s9, %s620_s9, %s621_s10  }
   0xe   :  { %611 = dma.done.wait [#allocation3], 128  }
   0xf   :  { %612 = vsyncadd [#allocation3], 4294967168 }
  0x10   :  { %613 = dma.done.wait [#allocation6], 2048  }
  0x11   :  { %614 = vsyncadd [#allocation6], 4294965248 }
  0x12   :  { %615 = dma.done.wait [#allocation9], 1024  }
  0x13   :  { %616 = vsyncadd [#allocation9], 4294966272  ;;  %v460_v0 = vld [vmem:[#allocation5 + $0x38] sm:$0xff]  ;;  %v459_v1 = vld [vmem:[#allocation5 + $0x30] sm:$0xff]  ;;  %s625_s24 = smov [#allocation10]   ;;  %s345_s28 = sshll.u32 %s697_s7, 4  ;;  %s346_s28 = int_to_ptr.hbm [resolvable:$true] %s345_s28 }
  0x14   :  { %158 = vmatpush.bf16.msra.mxu0 %v460_v0  ;;  %v468_v2 = vld [vmem:[#allocation7 + $0x38] sm:$0xff]  ;;  %v467_v3 = vld [vmem:[#allocation7 + $0x30] sm:$0xff]  ;;  %v458_v4 = vld [vmem:[#allocation5 + $0x28] sm:$0xff]  ;;  %s343_s25 = sshll.u32 %s625_s24, 4  ;;  %s344_s25 = int_to_ptr.vmem [resolvable:$true] %s343_s25 }
  0x15   :  { %241 = vmatpush.bf16.msra.mxu1 %v468_v2  ;;  %v466_v5 = vld [vmem:[#allocation7 + $0x28] sm:$0xff]  ;;  %v457_v6 = vld [vmem:[#allocation5 + $0x20] sm:$0xff]  ;;  %v456_v8 = vld [vmem:[#allocation5 + $0x18] sm:$0xff] }
  0x16   :  { %v465_v7 = vld [vmem:[#allocation7 + $0x20] sm:$0xff]  ;;  %v464_v9 = vld [vmem:[#allocation7 + $0x18] sm:$0xff]  ;;  %v455_v10 = vld [vmem:[#allocation5 + $0x10] sm:$0xff] }
  0x17   :  { %v454_v11 = vld [vmem:[#allocation5 + $0x8] sm:$0xff]  ;;  %v453_v12 = vld [vmem:[#allocation5] sm:$0xff]  ;;  %v88_v13 = vld [vmem:[#allocation2] sm:$0xff] }
  0x18   :  { %159 = vmatpush.bf16.msra.mxu0 %v459_v1  ;;  %v89_v14 = vpack.c.bf16 %v88_v13, %v88_v13  ;;  %v463_v15 = vld [vmem:[#allocation7 + $0x10] sm:$0xff]  ;;  %v462_v16 = vld [vmem:[#allocation7 + $0x8] sm:$0xff]  ;;  %v461_v17 = vld [vmem:[#allocation7] sm:$0xff] }
  0x19   :  { %242 = vmatpush.bf16.msra.mxu1 %v467_v3  ;;  %v476_v18 = vld [vmem:[#allocation8 + $0x38] sm:$0xff]  ;;  %v475_v19 = vld [vmem:[#allocation8 + $0x30] sm:$0xff]  ;;  %v474_v20 = vld [vmem:[#allocation8 + $0x28] sm:$0xff] }
  0x1a   :  { %324 = vmatpush.bf16.msra.mxu2 %v476_v18  ;;  %v473_v21 = vld [vmem:[#allocation8 + $0x20] sm:$0xff]  ;;  %v472_v22 = vld [vmem:[#allocation8 + $0x18] sm:$0xff]  ;;  %v471_v29 = vld [vmem:[#allocation8 + $0x10] sm:$0xff] }
  0x1b   :  { %v484_v23 = vld [vmem:[%s692_s2] ss:$0 sm:$0xff]  ;;  %v470_v30 = vld [vmem:[#allocation8 + $0x8] sm:$0xff]  ;;  %v469_v31 = vld [vmem:[#allocation8] sm:$0xff] }
  0x1c   :  { %160 = vmatpush.bf16.msra.mxu0 %v458_v4  ;;  %v485_v32 = vld [vmem:[%s694_s4] ss:$0 sm:$0xff] }
  0x1d   :  { %243 = vmatpush.bf16.msra.mxu1 %v466_v5  ;;  %v486_v38 = vld [vmem:[%s696_s6] ss:$0 sm:$0xff] }
  0x1e   :  { %325 = vmatpush.bf16.msra.mxu2 %v475_v19 }
  0x20   :  { %161 = vmatpush.bf16.msra.mxu0 %v457_v6 }
  0x21   :  { %244 = vmatpush.bf16.msra.mxu1 %v465_v7 }
  0x22   :  { %326 = vmatpush.bf16.msra.mxu2 %v474_v20 }
  0x24   :  { %162 = vmatpush.bf16.msra.mxu0 %v456_v8 }
  0x25   :  { %245 = vmatpush.bf16.msra.mxu1 %v464_v9 }
  0x26   :  { %327 = vmatpush.bf16.msra.mxu2 %v473_v21 }
  0x28   :  { %163 = vmatpush.bf16.msra.mxu0 %v455_v10 }
  0x29   :  { %246 = vmatpush.bf16.msra.mxu1 %v463_v15 }
  0x2a   :  { %328 = vmatpush.bf16.msra.mxu2 %v472_v22 }
  0x2c   :  { %164 = vmatpush.bf16.msra.mxu0 %v454_v11 }
  0x2d   :  { %247 = vmatpush.bf16.msra.mxu1 %v462_v16 }
  0x2e   :  { %329 = vmatpush.bf16.msra.mxu2 %v471_v29 }
  0x30   :  { %165 = vmatpush.bf16.msra.mxu0 %v453_v12 }
  0x31   :  { %248 = vmatpush.bf16.msra.mxu1 %v461_v17 }
  0x32   :  { %330 = vmatpush.bf16.msra.mxu2 %v470_v30 }
  0x33   :  { %166 = vmatmul.bf16.vlgmr.msra.gmra.mxu0 %v89_v14 }
  0x36   :  { %331 = vmatpush.bf16.msra.mxu2 %v469_v31 }
  0xb0   :  { %v167_v24 = vpop.f32.mrf.mxu0 }
  0xb1   :  { %v168_v25 = vadd.f32 %v484_v23, %v167_v24 }
  0xb3   :  { %487 = vtanh.f32 %v168_v25 }
  0xb8   :  { %v169_v26 = vpop.f32.mrf.mxu0 }
  0xb9   :  { %v488_v27 = vpop.eup %487 }
  0xba   :  { %v172_v28 = vpack.c.bf16 %v488_v27, %v488_v27 }
  0xbc   :  { %249 = vmatmul.bf16.vlgmr.msra.gmra.mxu1 %v172_v28 }
 0x139   :  { %v250_v33 = vpop.f32.mrf.mxu1 }
 0x13a   :  { %v251_v34 = vadd.f32 %v485_v32, %v250_v33 }
 0x13c   :  { %489 = vtanh.f32 %v251_v34 }
 0x141   :  { %v252_v35 = vpop.f32.mrf.mxu1 }
 0x142   :  { %v490_v36 = vpop.eup %489 }
 0x143   :  { %v255_v37 = vpack.c.bf16 %v490_v36, %v490_v36 }
 0x145   :  { %332 = vmatmul.bf16.vlgmr.msra.gmra.mxu2 %v255_v37 }
 0x1c8   :  { %v333_v39 = vpop.f32.mrf.mxu2 }
 0x1c9   :  { %v334_v40 = vadd.f32 %v486_v38, %v333_v39 }
 0x1cb   :  { %337 = vst [vmem:[#allocation10] sm:$0xff] %v334_v40 }
 0x1cc   :  { %348 = dma.vmem_to_hbm [thread:$0]  %s344_s25, 128, %s346_s28, [#allocation4]  }
 0x1d0   :  { %v335_v41 = vpop.f32.mrf.mxu2 }
 0x1d1   :  { %617 = dma.done.wait [#allocation4], 128  }
 0x1d2   :  { %618 = vsyncadd [#allocation4], 4294967168 }
 0x1d3   :  { %353 = vsyncpa [#allocation3], 1 }
 0x1d4   :  { %354 = vsyncpa [#allocation6], 1 }
 0x1d5   :  { %355 = vsyncpa [#allocation9], 1 }
 0x1d6   :  { %356 = vsyncpa [#allocation4], 1 }

// kernel: tpu_custom_call.1
= control target key start
LH: loop header
LB: loop body
LE: loop exit
PB: predicated region body
PF: predicated region fallthrough
CT: control target
= control target key end

     0   :  { %8 = vsyncpa [#allocation3], 0  ;;  %s311_s0 = inlined_call_operand.hbm [shape: f32[8,128], index: 0, kind: input, shape index: {}]   ;;  %s312_s1 = inlined_call_operand.hbm [shape: bf16[128,128], index: 1, kind: input, shape index: {}]   ;;  %s313_s2 = inlined_call_operand.vmem [shape: f32[1,128], index: 2, kind: input, shape index: {}]   ;;  %s314_s3 = inlined_call_operand.hbm [shape: f32[8,128], index: 3, kind: output, shape index: {}]  }
   0x1   :  { %9 = vsyncpa [#allocation6], 0 }
   0x2   :  { %10 = vsyncpa [#allocation4], 0  ;;  %s16_s14 = sshll.u32 %s311_s0, 4  ;;  %s274_s15 = smov [#allocation2]   ;;  %s17_s14 = int_to_ptr.hbm [resolvable:$true] %s16_s14 }
   0x3   :  { %s18_s16 = sshll.u32 %s274_s15, 4  ;;  %s26_s19 = sshll.u32 %s312_s1, 4  ;;  %s19_s16 = int_to_ptr.vmem [resolvable:$true] %s18_s16  ;;  %s27_s19 = int_to_ptr.hbm [resolvable:$true] %s26_s19 }
   0x4   :  { %21 = dma.hbm_to_vmem [thread:$0]  %s17_s14, 128, %s19_s16, [#allocation3]  }
   0x5   :  { %s275_s20 = smov [#allocation5]   ;;  %s276_s22 = smov 64  }
   0x6   :  { %s28_s21 = sshll.u32 %s275_s20, 4  ;;  %s277_s23 = smov 4   ;;  %s29_s21 = int_to_ptr.vmem [resolvable:$true] %s28_s21 }
   0x7   :  { %34 = dma.hbm_to_vmem [thread:$0]  %s27_s19, 1024, %s29_s21, [#allocation6], %s276_s22, %s276_s22, %s277_s23  }
   0x8   :  { %268 = dma.done.wait [#allocation3], 128  }
   0x9   :  { %269 = vsyncadd [#allocation3], 4294967168 }
   0xa   :  { %270 = dma.done.wait [#allocation6], 1024  }
   0xb   :  { %271 = vsyncadd [#allocation6], 4294966272  ;;  %v187_v0 = vld [vmem:[#allocation5 + $0x38] sm:$0xff]  ;;  %v186_v1 = vld [vmem:[#allocation5 + $0x30] sm:$0xff]  ;;  %s278_s24 = smov [#allocation7]   ;;  %s137_s28 = sshll.u32 %s314_s3, 4  ;;  %s138_s28 = int_to_ptr.hbm [resolvable:$true] %s137_s28 }
   0xc   :  { %115 = vmatpush.bf16.msra.mxu0 %v187_v0  ;;  %v185_v2 = vld [vmem:[#allocation5 + $0x28] sm:$0xff]  ;;  %v184_v3 = vld [vmem:[#allocation5 + $0x20] sm:$0xff]  ;;  %v183_v4 = vld [vmem:[#allocation5 + $0x18] sm:$0xff]  ;;  %s135_s25 = sshll.u32 %s278_s24, 4  ;;  %s136_s25 = int_to_ptr.vmem [resolvable:$true] %s135_s25 }
   0xd   :  { %v182_v5 = vld [vmem:[#allocation5 + $0x10] sm:$0xff]  ;;  %v181_v6 = vld [vmem:[#allocation5 + $0x8] sm:$0xff]  ;;  %v180_v7 = vld [vmem:[#allocation5] sm:$0xff] }
   0xe   :  { %v45_v8 = vld [vmem:[#allocation2] sm:$0xff] }
   0xf   :  { %v46_v9 = vpack.c.bf16 %v45_v8, %v45_v8  ;;  %v193_v10 = vld [vmem:[%s313_s2] ss:$0 sm:$0xff] }
  0x10   :  { %116 = vmatpush.bf16.msra.mxu0 %v186_v1 }
  0x14   :  { %117 = vmatpush.bf16.msra.mxu0 %v185_v2 }
  0x18   :  { %118 = vmatpush.bf16.msra.mxu0 %v184_v3 }
  0x1c   :  { %119 = vmatpush.bf16.msra.mxu0 %v183_v4 }
  0x20   :  { %120 = vmatpush.bf16.msra.mxu0 %v182_v5 }
  0x24   :  { %121 = vmatpush.bf16.msra.mxu0 %v181_v6 }
  0x28   :  { %122 = vmatpush.bf16.msra.mxu0 %v180_v7 }
  0x2b   :  { %123 = vmatmul.bf16.vlgmr.msra.gmra.mxu0 %v46_v9 }
  0xa8   :  { %v124_v11 = vpop.f32.mrf.mxu0 }
  0xa9   :  { %v125_v12 = vadd.f32 %v193_v10, %v124_v11 }
  0xab   :  { %194 = vtanh.f32 %v125_v12 }
  0xb0   :  { %v126_v13 = vpop.f32.mrf.mxu0 }
  0xb1   :  { %v195_v14 = vpop.eup %194 }
  0xb2   :  { %129 = vst [vmem:[#allocation7] sm:$0xff] %v195_v14 }
  0xb3   :  { %140 = dma.vmem_to_hbm [thread:$0]  %s136_s25, 128, %s138_s28, [#allocation4]  }
  0xb4   :  { %272 = dma.done.wait [#allocation4], 128  }
  0xb5   :  { %273 = vsyncadd [#allocation4], 4294967168 }
  0xb6   :  { %145 = vsyncpa [#allocation3], 1 }
  0xb7   :  { %146 = vsyncpa [#allocation6], 1 }
  0xb8   :  { %147 = vsyncpa [#allocation4], 1 }

// kernel: tpu_custom_call.1
= control target key start
LH: loop header
LB: loop body
LE: loop exit
PB: predicated region body
PF: predicated region fallthrough
CT: control target
= control target key end

     0   :  { %8 = vsyncpa [#allocation3], 0  ;;  %s311_s0 = inlined_call_operand.hbm [shape: f32[8,128], index: 0, kind: input, shape index: {}]   ;;  %s312_s1 = inlined_call_operand.hbm [shape: bf16[128,128], index: 1, kind: input, shape index: {}]   ;;  %s313_s2 = inlined_call_operand.vmem [shape: f32[1,128], index: 2, kind: input, shape index: {}]   ;;  %s314_s3 = inlined_call_operand.hbm [shape: f32[8,128], index: 3, kind: output, shape index: {}]  }
   0x1   :  { %9 = vsyncpa [#allocation6], 0 }
   0x2   :  { %10 = vsyncpa [#allocation4], 0  ;;  %s16_s14 = sshll.u32 %s311_s0, 4  ;;  %s274_s15 = smov [#allocation2]   ;;  %s17_s14 = int_to_ptr.hbm [resolvable:$true] %s16_s14 }
   0x3   :  { %s18_s16 = sshll.u32 %s274_s15, 4  ;;  %s26_s19 = sshll.u32 %s312_s1, 4  ;;  %s19_s16 = int_to_ptr.vmem [resolvable:$true] %s18_s16  ;;  %s27_s19 = int_to_ptr.hbm [resolvable:$true] %s26_s19 }
   0x4   :  { %21 = dma.hbm_to_vmem [thread:$0]  %s17_s14, 128, %s19_s16, [#allocation3]  }
   0x5   :  { %s275_s20 = smov [#allocation5]   ;;  %s276_s22 = smov 64  }
   0x6   :  { %s28_s21 = sshll.u32 %s275_s20, 4  ;;  %s277_s23 = smov 4   ;;  %s29_s21 = int_to_ptr.vmem [resolvable:$true] %s28_s21 }
   0x7   :  { %34 = dma.hbm_to_vmem [thread:$0]  %s27_s19, 1024, %s29_s21, [#allocation6], %s276_s22, %s276_s22, %s277_s23  }
   0x8   :  { %268 = dma.done.wait [#allocation3], 128  }
   0x9   :  { %269 = vsyncadd [#allocation3], 4294967168 }
   0xa   :  { %270 = dma.done.wait [#allocation6], 1024  }
   0xb   :  { %271 = vsyncadd [#allocation6], 4294966272  ;;  %v187_v0 = vld [vmem:[#allocation5 + $0x38] sm:$0xff]  ;;  %v186_v1 = vld [vmem:[#allocation5 + $0x30] sm:$0xff]  ;;  %s278_s24 = smov [#allocation7]   ;;  %s137_s28 = sshll.u32 %s314_s3, 4  ;;  %s138_s28 = int_to_ptr.hbm [resolvable:$true] %s137_s28 }
   0xc   :  { %115 = vmatpush.bf16.msra.mxu0 %v187_v0  ;;  %v185_v2 = vld [vmem:[#allocation5 + $0x28] sm:$0xff]  ;;  %v184_v3 = vld [vmem:[#allocation5 + $0x20] sm:$0xff]  ;;  %v183_v4 = vld [vmem:[#allocation5 + $0x18] sm:$0xff]  ;;  %s135_s25 = sshll.u32 %s278_s24, 4  ;;  %s136_s25 = int_to_ptr.vmem [resolvable:$true] %s135_s25 }
   0xd   :  { %v182_v5 = vld [vmem:[#allocation5 + $0x10] sm:$0xff]  ;;  %v181_v6 = vld [vmem:[#allocation5 + $0x8] sm:$0xff]  ;;  %v180_v7 = vld [vmem:[#allocation5] sm:$0xff] }
   0xe   :  { %v45_v8 = vld [vmem:[#allocation2] sm:$0xff] }
   0xf   :  { %v46_v9 = vpack.c.bf16 %v45_v8, %v45_v8  ;;  %v193_v10 = vld [vmem:[%s313_s2] ss:$0 sm:$0xff] }
  0x10   :  { %116 = vmatpush.bf16.msra.mxu0 %v186_v1 }
  0x14   :  { %117 = vmatpush.bf16.msra.mxu0 %v185_v2 }
  0x18   :  { %118 = vmatpush.bf16.msra.mxu0 %v184_v3 }
  0x1c   :  { %119 = vmatpush.bf16.msra.mxu0 %v183_v4 }
  0x20   :  { %120 = vmatpush.bf16.msra.mxu0 %v182_v5 }
  0x24   :  { %121 = vmatpush.bf16.msra.mxu0 %v181_v6 }
  0x28   :  { %122 = vmatpush.bf16.msra.mxu0 %v180_v7 }
  0x2b   :  { %123 = vmatmul.bf16.vlgmr.msra.gmra.mxu0 %v46_v9 }
  0xa8   :  { %v124_v11 = vpop.f32.mrf.mxu0 }
  0xa9   :  { %v125_v12 = vadd.f32 %v193_v10, %v124_v11 }
  0xab   :  { %194 = vtanh.f32 %v125_v12 }
  0xb0   :  { %v126_v13 = vpop.f32.mrf.mxu0 }
  0xb1   :  { %v195_v14 = vpop.eup %194 }
  0xb2   :  { %129 = vst [vmem:[#allocation7] sm:$0xff] %v195_v14 }
  0xb3   :  { %140 = dma.vmem_to_hbm [thread:$0]  %s136_s25, 128, %s138_s28, [#allocation4]  }
  0xb4   :  { %272 = dma.done.wait [#allocation4], 128  }
  0xb5   :  { %273 = vsyncadd [#allocation4], 4294967168 }
  0xb6   :  { %145 = vsyncpa [#allocation3], 1 }
  0xb7   :  { %146 = vsyncpa [#allocation6], 1 }
  0xb8   :  { %147 = vsyncpa [#allocation4], 1 }

</bundles_post_ra>
